<compile_context>
chip_gen: v7x
topology: tpu7x:2x2x1
jax: 0.10.0
libtpu: 0.0.40
codegen_flags: <defaults>
</compile_context>

<pallas_src>
import jax
import jax.numpy as jnp
from jax import lax
from jax.experimental import pallas as pl
from jax.experimental.pallas import tpu as pltpu


# ------------------------------ layer-streamed kernel ------------------------------
def make_layer_streamed_kernel(num_layers, B, T, H, H2, O, compute_dtype):
    cd = compute_dtype

    def kernel(x_ref, wih_ref, whh_ref, bias_ref, w2_ref, b2_ref, w3_ref, b3_ref,
               out_ref, seq_ref):
        l = pl.program_id(0)

        # Layer 0: seed the carried activation scratch from the (already
        # time-major, lane-padded) input.
        @pl.when(l == 0)
        def _():
            seq_ref[...] = x_ref[...]

        seq = seq_ref[...]            # (T*B, H) f32, rows ordered t*B + b
        wih = wih_ref[0]              # (H, 4H)   compute dtype (wrapper-cast)
        whh = whh_ref[0]              # (H, 4H)
        bias = bias_ref[0]            # (1, 4H)   f32 (b_ih + b_hh)

        # Hoisted input projection for ALL timesteps: one big MXU matmul per
        # layer; only h @ W_hh stays on the serial critical path.
        proj = jnp.dot(seq.astype(cd), wih,
                       preferred_element_type=jnp.float32) + bias   # (T*B, 4H)

        h = jnp.zeros((B, H), jnp.float32)
        c = jnp.zeros((B, H), jnp.float32)
        hs = []
        # T is static & tiny (T=4 at the real config): fully unrolled; step-t
        # gates are a contiguous B-row sublane slice of `proj`.
        # TODO(synk): if the bundle dump shows the per-step h@W_hh matmul is
        # dominated by MXU weight pushes at tiny B, evaluate the transposed
        # orientation / explicit matmul_push_rhs staging.
        for t in range(T):
            gates = proj[t * B:(t + 1) * B, :] + jnp.dot(
                h.astype(cd), whh, preferred_element_type=jnp.float32)
            # PyTorch gate order: i, f, g, o (128-lane aligned at H=512).
            i = jax.nn.sigmoid(gates[:, 0:H])
            f = jax.nn.sigmoid(gates[:, H:2 * H])
            g = jnp.tanh(gates[:, 2 * H:3 * H])
            o = jax.nn.sigmoid(gates[:, 3 * H:4 * H])
            c = f * c + i * g
            h = o * jnp.tanh(c)
            hs.append(h)

        @pl.when(l < num_layers - 1)
        def _():
            # Next layer's input, still time-major (row = t*B + b): pure
            # sublane concat, no lane<->sublane relayout on the serial path.
            seq_ref[...] = jnp.concatenate(hs, axis=0)

        @pl.when(l == num_layers - 1)
        def _():
            # Batch-major lane-dense slab == x.contiguous().view(-1, T*H).
            mlp_in = jnp.concatenate(hs, axis=1)                     # (B, T*H)
            hmid = jnp.maximum(
                jnp.dot(mlp_in.astype(cd), w2_ref[...],
                        preferred_element_type=jnp.float32) + b2_ref[...], 0.0)
            y = jnp.maximum(
                jnp.dot(hmid.astype(cd), w3_ref[...],
                        preferred_element_type=jnp.float32) + b3_ref[...], 0.0)
            out_ref[...] = y

    return kernel


def forward(params, x, *, compute_dtype=None):
    """x: (B, T, input_size), batch_first like the PyTorch module."""
    B, T, D = x.shape
    lstm_layers = params["lstm"]
    L = len(lstm_layers)
    H = lstm_layers[0]["w_hh_t"].shape[0]
    H2 = params["w2_t"].shape[1]
    O = params["w3_t"].shape[1]
    assert params["w2_t"].shape[0] == T * H, "layer2 in_features must equal seq*hidden"
    assert D <= H, "layer-0 lane padding assumes input_size <= hidden_size"

    if compute_dtype is None:
        # Weight-DMA bound at the real H=512 / 6-layer config -> bf16 weights
        # by default there (f32 accumulation & f32 gates/cell state inside the
        # kernel); exact f32 at tiny toy shapes.
        compute_dtype = jnp.bfloat16 if H >= 256 else jnp.float32
    use_low = jnp.dtype(compute_dtype) != jnp.dtype(jnp.float32)
    cast_w = (lambda w: w.astype(compute_dtype)) if use_low else (lambda w: w)

    # Stack per-layer weights so the kernel streams one layer at a time
    # (double-buffered by the BlockSpec pipeline).  Layer 0's w_ih leading dim
    # is D != H: zero-pad its contraction rows (and x's feature lanes) to H so
    # the layer grid is uniform; the padded zeros contribute exactly 0.
    wih_list = []
    for li, lyr in enumerate(lstm_layers):
        w = lyr["w_ih_t"]
        if li == 0 and D < H:
            w = jnp.pad(w, ((0, H - D), (0, 0)))
        wih_list.append(w)
    wih_all = cast_w(jnp.stack(wih_list, axis=0))                       # (L, H, 4H)
    whh_all = cast_w(jnp.stack([p["w_hh_t"] for p in lstm_layers], 0))  # (L, H, 4H)
    bias_all = jnp.stack([p["bias"] for p in lstm_layers], 0)           # (L, 1, 4H) f32
    w2 = cast_w(params["w2_t"])
    w3 = cast_w(params["w3_t"])
    b2, b3 = params["b2"], params["b3"]

    # Time-major input rows (row = t*B + b), lane-padded D -> H.
    x_tm = jnp.transpose(x, (1, 0, 2)).reshape(T * B, D).astype(jnp.float32)
    if D < H:
        x_tm = jnp.pad(x_tm, ((0, 0), (0, H - D)))

    # VMEM budget: 2x (double-buffered) one layer's streamed weights + the
    # resident head/input/output + the activation scratch, with headroom.
    wsize = jnp.dtype(compute_dtype).itemsize
    per_layer_bytes = 2 * (H * 4 * H) * wsize + (4 * H) * 4
    resident_bytes = (x_tm.size * 4 + int(w2.size) * wsize + int(w3.size) * wsize
                      + int(b2.size) * 4 + int(b3.size) * 4 + B * O * 4)
    scratch_bytes = T * B * H * 4
    vmem_need = 2 * per_layer_bytes + resident_bytes + scratch_bytes
    vmem_limit = int(min(max(2 * vmem_need, 32 * 1024 * 1024), 100 * 1024 * 1024))

    # Advisory cost estimate for XLA's scheduler.
    flops = (L * (2 * B * T * H * 4 * H)          # hoisted input projections
             + L * (2 * B * T * H * 4 * H)        # recurrent matmuls
             + 2 * B * (T * H) * H2 + 2 * B * H2 * O)
    transcendentals = L * T * B * 5 * H           # 3 sigmoid + 2 tanh per step
    bytes_accessed = (int(wih_all.size) * wsize + int(whh_all.size) * wsize
                      + int(bias_all.size) * 4 + int(w2.size) * wsize
                      + int(w3.size) * wsize + int(b2.size + b3.size) * 4
                      + int(x_tm.size) * 4 + B * O * 4)

    kernel = make_layer_streamed_kernel(L, B, T, H, H2, O, compute_dtype)
    return pl.pallas_call(
        kernel,
        out_shape=jax.ShapeDtypeStruct((B, O), jnp.float32),
        grid_spec=pltpu.PrefetchScalarGridSpec(
            num_scalar_prefetch=0,
            grid=(L,),
            in_specs=[
                pl.BlockSpec((T * B, H), lambda l: (0, 0)),         # x (resident, tiny)
                pl.BlockSpec((1, H, 4 * H), lambda l: (l, 0, 0)),   # w_ih[l] (streamed)
                pl.BlockSpec((1, H, 4 * H), lambda l: (l, 0, 0)),   # w_hh[l] (streamed)
                pl.BlockSpec((1, 1, 4 * H), lambda l: (l, 0, 0)),   # bias[l] (streamed)
                pl.BlockSpec((T * H, H2), lambda l: (0, 0)),        # w2 (resident)
                pl.BlockSpec((1, H2), lambda l: (0, 0)),            # b2
                pl.BlockSpec((H2, O), lambda l: (0, 0)),            # w3
                pl.BlockSpec((1, O), lambda l: (0, 0)),             # b3
            ],
            out_specs=pl.BlockSpec((B, O), lambda l: (0, 0)),
            scratch_shapes=[pltpu.VMEM((T * B, H), jnp.float32)],   # carried activation
        ),
        compiler_params=pltpu.CompilerParams(
            # Serial layer dependency -> "arbitrary".
            dimension_semantics=("arbitrary",),
            vmem_limit_bytes=vmem_limit,
        ),
        cost_estimate=pl.CostEstimate(
            flops=int(flops),
            transcendentals=int(transcendentals),
            bytes_accessed=int(bytes_accessed),
        ),
    )(x_tm, wih_all, whh_all, bias_all, w2, b2, w3, b3)


# ------------------------------ params ------------------------------
def init_params(key, input_size, hidden_size, output_size, num_layer, seq_len):
    params = {"lstm": []}
    k = key
    scale = 1.0 / float(jnp.sqrt(jnp.float32(hidden_size)))
    for l in range(num_layer):
        in_dim = input_size if l == 0 else hidden_size
        k, k1, k2, k3, k4 = jax.random.split(k, 5)
        w_ih = jax.random.uniform(k1, (4 * hidden_size, in_dim), jnp.float32, -scale, scale)
        w_hh = jax.random.uniform(k2, (4 * hidden_size, hidden_size), jnp.float32, -scale, scale)
        b_ih = jax.random.uniform(k3, (4 * hidden_size,), jnp.float32, -scale, scale)
        b_hh = jax.random.uniform(k4, (4 * hidden_size,), jnp.float32, -scale, scale)
        params["lstm"].append({
            "w_ih_t": w_ih.T,                        # (in_dim, 4H)
            "w_hh_t": w_hh.T,                        # (H, 4H)
            "bias": (b_ih + b_hh).reshape(1, -1),    # (1, 4H)
        })
    d2_in = seq_len * hidden_size  # == 2048 in the original config (4 * 512)
    k, k5, k6, k7, k8 = jax.random.split(k, 5)
    s2 = 1.0 / float(jnp.sqrt(jnp.float32(d2_in)))
    s3 = 1.0 / float(jnp.sqrt(jnp.float32(hidden_size)))
    w2 = jax.random.uniform(k5, (hidden_size, d2_in), jnp.float32, -s2, s2)
    b2 = jax.random.uniform(k6, (hidden_size,), jnp.float32, -s2, s2)
    w3 = jax.random.uniform(k7, (output_size, hidden_size), jnp.float32, -s3, s3)
    b3 = jax.random.uniform(k8, (output_size,), jnp.float32, -s3, s3)
    params["w2_t"] = w2.T
    params["b2"] = b2.reshape(1, -1)
    params["w3_t"] = w3.T
    params["b3"] = b3.reshape(1, -1)
    return params


# ------------------------------ pure-JAX reference ------------------------------
def reference_forward(params, x):
    B, T, _ = x.shape
    h_seq = jnp.transpose(x, (1, 0, 2))
    for layer in params["lstm"]:
        H = layer["w_hh_t"].shape[0]

        def step(carry, x_t, layer=layer):
            h, c = carry
            gates = x_t @ layer["w_ih_t"] + h @ layer["w_hh_t"] + layer["bias"]
            i, f, g, o = jnp.split(gates, 4, axis=-1)
            i = jax.nn.sigmoid(i)
            f = jax.nn.sigmoid(f)
            g = jnp.tanh(g)
            o = jax.nn.sigmoid(o)
            c = f * c + i * g
            h = o * jnp.tanh(c)
            return (h, c), h

        init = (jnp.zeros((B, H), jnp.float32), jnp.zeros((B, H), jnp.float32))
        _, h_seq = lax.scan(step, init, h_seq)
    h = jnp.transpose(h_seq, (1, 0, 2)).reshape(B, -1)
    h = jnp.maximum(h @ params["w2_t"] + params["b2"], 0.0)
    return jnp.maximum(h @ params["w3_t"] + params["b3"], 0.0)


if __name__ == "__main__":
    # Small shapes consistent with the module's forward (seq*hidden feeds layer2).
    # L=3 exercises all three layer roles in the streamed grid: first (seeds the
    # scratch), middle (reads + writes scratch), last (MLP head + output write).
    B, T, I, H, O, L = 2, 4, 4, 32, 10, 3
    key = jax.random.PRNGKey(0)
    kx, kp = jax.random.split(key)
    x = jax.random.normal(kx, (B, T, I), jnp.float32)
    params = init_params(kp, input_size=I, hidden_size=H, output_size=O,
                         num_layer=L, seq_len=T)

    # TODO(synk): the `print(x.size())` in the PyTorch forward is a host-side
    # debug print; omitted.

    ref = reference_forward(params, x)

    # f32 path: tight check against the f32 reference.
    out = jax.jit(lambda p, xx: forward(p, xx, compute_dtype=jnp.float32))(params, x)
    jax.block_until_ready(out)
    assert out.shape == (B, O), out.shape
    assert jnp.allclose(out, ref, atol=2e-4, rtol=2e-4), "f32 kernel mismatch vs JAX reference"

    # bf16-weight path (default for the real H=512 / 6-layer config, where the
    # kernel is weight-DMA bound): looser tolerance against the f32 reference.
    out_bf16 = jax.jit(lambda p, xx: forward(p, xx, compute_dtype=jnp.bfloat16))(params, x)
    jax.block_until_ready(out_bf16)
    assert out_bf16.shape == (B, O), out_bf16.shape
    assert jnp.allclose(out_bf16, ref, atol=6e-2, rtol=6e-2), "bf16 kernel mismatch vs JAX reference"

    print("KERNEL_OK")
</pallas_src>

<mosaic_0001>
module attributes {stable_mosaic.version = 11 : i64} {
  func.func @kernel(%arg0: i32, %arg1: memref<8x32xf32, #tpu.memory_space<vmem>>, %arg2: memref<1x32x128xf32, #tpu.memory_space<vmem>>, %arg3: memref<1x32x128xf32, #tpu.memory_space<vmem>>, %arg4: memref<1x1x128xf32, #tpu.memory_space<vmem>>, %arg5: memref<128x32xf32, #tpu.memory_space<vmem>>, %arg6: memref<1x32xf32, #tpu.memory_space<vmem>>, %arg7: memref<32x10xf32, #tpu.memory_space<vmem>>, %arg8: memref<1x10xf32, #tpu.memory_space<vmem>>, %arg9: memref<2x10xf32, #tpu.memory_space<vmem>>, %arg10: memref<8x32xf32, #tpu.memory_space<vmem>>) attributes {dimension_semantics = [#tpu.dimension_semantics<arbitrary>], iteration_bounds = array<i64: 3>, scalar_prefetch = 0 : i64, scratch_operands = 1 : i64, tpu.core_type = #tpu.core_type<tc>, window_params = [{pipeline_mode = #tpu.pipeline_mode<synchronous>, transform_indices = @transform_0, window_bounds = array<i64: 8, 32>}, {transform_indices = @transform_1, window_bounds = array<i64: 1, 32, 128>}, {transform_indices = @transform_2, window_bounds = array<i64: 1, 32, 128>}, {transform_indices = @transform_3, window_bounds = array<i64: 1, 1, 128>}, {pipeline_mode = #tpu.pipeline_mode<synchronous>, transform_indices = @transform_4, window_bounds = array<i64: 128, 32>}, {pipeline_mode = #tpu.pipeline_mode<synchronous>, transform_indices = @transform_5, window_bounds = array<i64: 1, 32>}, {pipeline_mode = #tpu.pipeline_mode<synchronous>, transform_indices = @transform_6, window_bounds = array<i64: 32, 10>}, {pipeline_mode = #tpu.pipeline_mode<synchronous>, transform_indices = @transform_7, window_bounds = array<i64: 1, 10>}, {pipeline_mode = #tpu.pipeline_mode<synchronous>, transform_indices = @transform_8, window_bounds = array<i64: 2, 10>}]} {
    %c0_i32 = arith.constant 0 : i32
    %0 = arith.cmpi eq, %arg0, %c0_i32 : i32
    %1 = arith.extui %0 : i1 to i32
    %c0_i32_0 = arith.constant 0 : i32
    %2 = arith.cmpi ne, %1, %c0_i32_0 : i32
    scf.if %2 {
      %c0_32 = arith.constant 0 : index
      %c0_33 = arith.constant 0 : index
      %133 = vector.load %arg1[%c0_32, %c0_33] : memref<8x32xf32, #tpu.memory_space<vmem>>, vector<8x32xf32>
      %c0_34 = arith.constant 0 : index
      %c0_35 = arith.constant 0 : index
      %134 = vector.load %arg10[%c0_34, %c0_35] : memref<8x32xf32, #tpu.memory_space<vmem>>, vector<8x32xf32>
      tpu.vector_store %arg10[%c0_34, %c0_35], %133 {strides = array<i32>} : memref<8x32xf32, #tpu.memory_space<vmem>>, vector<8x32xf32>,
    } else {
    }
    %c0 = arith.constant 0 : index
    %c0_1 = arith.constant 0 : index
    %3 = vector.load %arg10[%c0, %c0_1] : memref<8x32xf32, #tpu.memory_space<vmem>>, vector<8x32xf32>
    %c0_2 = arith.constant 0 : index
    %c0_3 = arith.constant 0 : index
    %c0_4 = arith.constant 0 : index
    %4 = vector.load %arg2[%c0_2, %c0_3, %c0_4] : memref<1x32x128xf32, #tpu.memory_space<vmem>>, vector<1x32x128xf32>
    %5 = vector.shape_cast %4 : vector<1x32x128xf32> to vector<32x128xf32>
    %c0_5 = arith.constant 0 : index
    %c0_6 = arith.constant 0 : index
    %c0_7 = arith.constant 0 : index
    %6 = vector.load %arg3[%c0_5, %c0_6, %c0_7] : memref<1x32x128xf32, #tpu.memory_space<vmem>>, vector<1x32x128xf32>
    %7 = vector.shape_cast %6 : vector<1x32x128xf32> to vector<32x128xf32>
    %c0_8 = arith.constant 0 : index
    %c0_9 = arith.constant 0 : index
    %c0_10 = arith.constant 0 : index
    %8 = vector.load %arg4[%c0_8, %c0_9, %c0_10] : memref<1x1x128xf32, #tpu.memory_space<vmem>>, vector<1x1x128xf32>
    %9 = vector.shape_cast %8 : vector<1x1x128xf32> to vector<1x128xf32>
    %cst = arith.constant dense<0.000000e+00> : vector<8x128xf32>
    %10 = tpu.matmul %3, %5, %cst {dimension_numbers = #tpu.dot_dimension_numbers<[1], [0], [0], [1], [0, 0, 1, 1], [], []>} : vector<8x32xf32>, vector<32x128xf32>, vector<8x128xf32> -> vector<8x128xf32>
    %11 = vector.broadcast %9 : vector<1x128xf32> to vector<8x128xf32>
    %12 = arith.addf %10, %11 : vector<8x128xf32>
    %cst_11 = arith.constant 0.000000e+00 : f32
    %13 = vector.broadcast %cst_11 : f32 to vector<2x32xf32>
    %cst_12 = arith.constant 0.000000e+00 : f32
    %14 = vector.broadcast %cst_12 : f32 to vector<2x32xf32>
    %15 = vector.extract_strided_slice %12 {offsets = [0, 0], sizes = [2, 128], strides = [1, 1]} : vector<8x128xf32> to vector<2x128xf32>
    %cst_13 = arith.constant dense<0.000000e+00> : vector<2x128xf32>
    %16 = tpu.matmul %13, %7, %cst_13 {dimension_numbers = #tpu.dot_dimension_numbers<[1], [0], [0], [1], [0, 0, 1, 1], [], []>} : vector<2x32xf32>, vector<32x128xf32>, vector<2x128xf32> -> vector<2x128xf32>
    %17 = arith.addf %15, %16 : vector<2x128xf32>
    %18 = vector.extract_strided_slice %17 {offsets = [0, 0], sizes = [2, 32], strides = [1, 1]} : vector<2x128xf32> to vector<2x32xf32>
    %19 = arith.negf %18 : vector<2x32xf32>
    %20 = math.exp %19 : vector<2x32xf32>
    %cst_14 = arith.constant 1.000000e+00 : f32
    %21 = vector.broadcast %cst_14 : f32 to vector<2x32xf32>
    %22 = arith.addf %21, %20 : vector<2x32xf32>
    %23 = arith.divf %21, %22 : vector<2x32xf32>
    %24 = vector.extract_strided_slice %17 {offsets = [0, 32], sizes = [2, 32], strides = [1, 1]} : vector<2x128xf32> to vector<2x32xf32>
    %25 = arith.negf %24 : vector<2x32xf32>
    %26 = math.exp %25 : vector<2x32xf32>
    %cst_15 = arith.constant 1.000000e+00 : f32
    %27 = vector.broadcast %cst_15 : f32 to vector<2x32xf32>
    %28 = arith.addf %27, %26 : vector<2x32xf32>
    %29 = arith.divf %27, %28 : vector<2x32xf32>
    %30 = vector.extract_strided_slice %17 {offsets = [0, 64], sizes = [2, 32], strides = [1, 1]} : vector<2x128xf32> to vector<2x32xf32>
    %31 = math.tanh %30 : vector<2x32xf32>
    %32 = vector.extract_strided_slice %17 {offsets = [0, 96], sizes = [2, 32], strides = [1, 1]} : vector<2x128xf32> to vector<2x32xf32>
    %33 = arith.negf %32 : vector<2x32xf32>
    %34 = math.exp %33 : vector<2x32xf32>
    %cst_16 = arith.constant 1.000000e+00 : f32
    %35 = vector.broadcast %cst_16 : f32 to vector<2x32xf32>
    %36 = arith.addf %35, %34 : vector<2x32xf32>
    %37 = arith.divf %35, %36 : vector<2x32xf32>
    %38 = arith.mulf %29, %14 : vector<2x32xf32>
    %39 = arith.mulf %23, %31 : vector<2x32xf32>
    %40 = arith.addf %38, %39 : vector<2x32xf32>
    %41 = math.tanh %40 : vector<2x32xf32>
    %42 = arith.mulf %37, %41 : vector<2x32xf32>
    %43 = vector.extract_strided_slice %12 {offsets = [2, 0], sizes = [2, 128], strides = [1, 1]} : vector<8x128xf32> to vector<2x128xf32>
    %cst_17 = arith.constant dense<0.000000e+00> : vector<2x128xf32>
    %44 = tpu.matmul %42, %7, %cst_17 {dimension_numbers = #tpu.dot_dimension_numbers<[1], [0], [0], [1], [0, 0, 1, 1], [], []>} : vector<2x32xf32>, vector<32x128xf32>, vector<2x128xf32> -> vector<2x128xf32>
    %45 = arith.addf %43, %44 : vector<2x128xf32>
    %46 = vector.extract_strided_slice %45 {offsets = [0, 0], sizes = [2, 32], strides = [1, 1]} : vector<2x128xf32> to vector<2x32xf32>
    %47 = arith.negf %46 : vector<2x32xf32>
    %48 = math.exp %47 : vector<2x32xf32>
    %cst_18 = arith.constant 1.000000e+00 : f32
    %49 = vector.broadcast %cst_18 : f32 to vector<2x32xf32>
    %50 = arith.addf %49, %48 : vector<2x32xf32>
    %51 = arith.divf %49, %50 : vector<2x32xf32>
    %52 = vector.extract_strided_slice %45 {offsets = [0, 32], sizes = [2, 32], strides = [1, 1]} : vector<2x128xf32> to vector<2x32xf32>
    %53 = arith.negf %52 : vector<2x32xf32>
    %54 = math.exp %53 : vector<2x32xf32>
    %cst_19 = arith.constant 1.000000e+00 : f32
    %55 = vector.broadcast %cst_19 : f32 to vector<2x32xf32>
    %56 = arith.addf %55, %54 : vector<2x32xf32>
    %57 = arith.divf %55, %56 : vector<2x32xf32>
    %58 = vector.extract_strided_slice %45 {offsets = [0, 64], sizes = [2, 32], strides = [1, 1]} : vector<2x128xf32> to vector<2x32xf32>
    %59 = math.tanh %58 : vector<2x32xf32>
    %60 = vector.extract_strided_slice %45 {offsets = [0, 96], sizes = [2, 32], strides = [1, 1]} : vector<2x128xf32> to vector<2x32xf32>
    %61 = arith.negf %60 : vector<2x32xf32>
    %62 = math.exp %61 : vector<2x32xf32>
    %cst_20 = arith.constant 1.000000e+00 : f32
    %63 = vector.broadcast %cst_20 : f32 to vector<2x32xf32>
    %64 = arith.addf %63, %62 : vector<2x32xf32>
    %65 = arith.divf %63, %64 : vector<2x32xf32>
    %66 = arith.mulf %57, %40 : vector<2x32xf32>
    %67 = arith.mulf %51, %59 : vector<2x32xf32>
    %68 = arith.addf %66, %67 : vector<2x32xf32>
    %69 = math.tanh %68 : vector<2x32xf32>
    %70 = arith.mulf %65, %69 : vector<2x32xf32>
    %71 = vector.extract_strided_slice %12 {offsets = [4, 0], sizes = [2, 128], strides = [1, 1]} : vector<8x128xf32> to vector<2x128xf32>
    %cst_21 = arith.constant dense<0.000000e+00> : vector<2x128xf32>
    %72 = tpu.matmul %70, %7, %cst_21 {dimension_numbers = #tpu.dot_dimension_numbers<[1], [0], [0], [1], [0, 0, 1, 1], [], []>} : vector<2x32xf32>, vector<32x128xf32>, vector<2x128xf32> -> vector<2x128xf32>
    %73 = arith.addf %71, %72 : vector<2x128xf32>
    %74 = vector.extract_strided_slice %73 {offsets = [0, 0], sizes = [2, 32], strides = [1, 1]} : vector<2x128xf32> to vector<2x32xf32>
    %75 = arith.negf %74 : vector<2x32xf32>
    %76 = math.exp %75 : vector<2x32xf32>
    %cst_22 = arith.constant 1.000000e+00 : f32
    %77 = vector.broadcast %cst_22 : f32 to vector<2x32xf32>
    %78 = arith.addf %77, %76 : vector<2x32xf32>
    %79 = arith.divf %77, %78 : vector<2x32xf32>
    %80 = vector.extract_strided_slice %73 {offsets = [0, 32], sizes = [2, 32], strides = [1, 1]} : vector<2x128xf32> to vector<2x32xf32>
    %81 = arith.negf %80 : vector<2x32xf32>
    %82 = math.exp %81 : vector<2x32xf32>
    %cst_23 = arith.constant 1.000000e+00 : f32
    %83 = vector.broadcast %cst_23 : f32 to vector<2x32xf32>
    %84 = arith.addf %83, %82 : vector<2x32xf32>
    %85 = arith.divf %83, %84 : vector<2x32xf32>
    %86 = vector.extract_strided_slice %73 {offsets = [0, 64], sizes = [2, 32], strides = [1, 1]} : vector<2x128xf32> to vector<2x32xf32>
    %87 = math.tanh %86 : vector<2x32xf32>
    %88 = vector.extract_strided_slice %73 {offsets = [0, 96], sizes = [2, 32], strides = [1, 1]} : vector<2x128xf32> to vector<2x32xf32>
    %89 = arith.negf %88 : vector<2x32xf32>
    %90 = math.exp %89 : vector<2x32xf32>
    %cst_24 = arith.constant 1.000000e+00 : f32
    %91 = vector.broadcast %cst_24 : f32 to vector<2x32xf32>
    %92 = arith.addf %91, %90 : vector<2x32xf32>
    %93 = arith.divf %91, %92 : vector<2x32xf32>
    %94 = arith.mulf %85, %68 : vector<2x32xf32>
    %95 = arith.mulf %79, %87 : vector<2x32xf32>
    %96 = arith.addf %94, %95 : vector<2x32xf32>
    %97 = math.tanh %96 : vector<2x32xf32>
    %98 = arith.mulf %93, %97 : vector<2x32xf32>
    %99 = vector.extract_strided_slice %12 {offsets = [6, 0], sizes = [2, 128], strides = [1, 1]} : vector<8x128xf32> to vector<2x128xf32>
    %cst_25 = arith.constant dense<0.000000e+00> : vector<2x128xf32>
    %100 = tpu.matmul %98, %7, %cst_25 {dimension_numbers = #tpu.dot_dimension_numbers<[1], [0], [0], [1], [0, 0, 1, 1], [], []>} : vector<2x32xf32>, vector<32x128xf32>, vector<2x128xf32> -> vector<2x128xf32>
    %101 = arith.addf %99, %100 : vector<2x128xf32>
    %102 = vector.extract_strided_slice %101 {offsets = [0, 0], sizes = [2, 32], strides = [1, 1]} : vector<2x128xf32> to vector<2x32xf32>
    %103 = arith.negf %102 : vector<2x32xf32>
    %104 = math.exp %103 : vector<2x32xf32>
    %cst_26 = arith.constant 1.000000e+00 : f32
    %105 = vector.broadcast %cst_26 : f32 to vector<2x32xf32>
    %106 = arith.addf %105, %104 : vector<2x32xf32>
    %107 = arith.divf %105, %106 : vector<2x32xf32>
    %108 = vector.extract_strided_slice %101 {offsets = [0, 32], sizes = [2, 32], strides = [1, 1]} : vector<2x128xf32> to vector<2x32xf32>
    %109 = arith.negf %108 : vector<2x32xf32>
    %110 = math.exp %109 : vector<2x32xf32>
    %cst_27 = arith.constant 1.000000e+00 : f32
    %111 = vector.broadcast %cst_27 : f32 to vector<2x32xf32>
    %112 = arith.addf %111, %110 : vector<2x32xf32>
    %113 = arith.divf %111, %112 : vector<2x32xf32>
    %114 = vector.extract_strided_slice %101 {offsets = [0, 64], sizes = [2, 32], strides = [1, 1]} : vector<2x128xf32> to vector<2x32xf32>
    %115 = math.tanh %114 : vector<2x32xf32>
    %116 = vector.extract_strided_slice %101 {offsets = [0, 96], sizes = [2, 32], strides = [1, 1]} : vector<2x128xf32> to vector<2x32xf32>
    %117 = arith.negf %116 : vector<2x32xf32>
    %118 = math.exp %117 : vector<2x32xf32>
    %cst_28 = arith.constant 1.000000e+00 : f32
    %119 = vector.broadcast %cst_28 : f32 to vector<2x32xf32>
    %120 = arith.addf %119, %118 : vector<2x32xf32>
    %121 = arith.divf %119, %120 : vector<2x32xf32>
    %122 = arith.mulf %113, %96 : vector<2x32xf32>
    %123 = arith.mulf %107, %115 : vector<2x32xf32>
    %124 = arith.addf %122, %123 : vector<2x32xf32>
    %125 = math.tanh %124 : vector<2x32xf32>
    %126 = arith.mulf %121, %125 : vector<2x32xf32>
    %c2_i32 = arith.constant 2 : i32
    %127 = arith.cmpi slt, %arg0, %c2_i32 : i32
    %128 = arith.extui %127 : i1 to i32
    %c0_i32_29 = arith.constant 0 : i32
    %129 = arith.cmpi ne, %128, %c0_i32_29 : i32
    scf.if %129 {
      %133 = tpu.concatenate %42, %70, %98, %126 in 0 : vector<2x32xf32>, vector<2x32xf32>, vector<2x32xf32>, vector<2x32xf32> -> vector<8x32xf32>
      %c0_32 = arith.constant 0 : index
      %c0_33 = arith.constant 0 : index
      %134 = vector.load %arg10[%c0_32, %c0_33] : memref<8x32xf32, #tpu.memory_space<vmem>>, vector<8x32xf32>
      tpu.vector_store %arg10[%c0_32, %c0_33], %133 {strides = array<i32>} : memref<8x32xf32, #tpu.memory_space<vmem>>, vector<8x32xf32>,
    } else {
    }
    %c2_i32_30 = arith.constant 2 : i32
    %130 = arith.cmpi eq, %arg0, %c2_i32_30 : i32
    %131 = arith.extui %130 : i1 to i32
    %c0_i32_31 = arith.constant 0 : i32
    %132 = arith.cmpi ne, %131, %c0_i32_31 : i32
    scf.if %132 {
      %133 = tpu.concatenate %42, %70, %98, %126 in 1 : vector<2x32xf32>, vector<2x32xf32>, vector<2x32xf32>, vector<2x32xf32> -> vector<2x128xf32>
      %c0_32 = arith.constant 0 : index
      %c0_33 = arith.constant 0 : index
      %134 = vector.load %arg5[%c0_32, %c0_33] : memref<128x32xf32, #tpu.memory_space<vmem>>, vector<128x32xf32>
      %cst_34 = arith.constant dense<0.000000e+00> : vector<2x32xf32>
      %135 = tpu.matmul %133, %134, %cst_34 {dimension_numbers = #tpu.dot_dimension_numbers<[1], [0], [0], [1], [0, 0, 1, 1], [], []>} : vector<2x128xf32>, vector<128x32xf32>, vector<2x32xf32> -> vector<2x32xf32>
      %c0_35 = arith.constant 0 : index
      %c0_36 = arith.constant 0 : index
      %136 = vector.load %arg6[%c0_35, %c0_36] : memref<1x32xf32, #tpu.memory_space<vmem>>, vector<1x32xf32>
      %137 = vector.broadcast %136 : vector<1x32xf32> to vector<2x32xf32>
      %138 = arith.addf %135, %137 : vector<2x32xf32>
      %cst_37 = arith.constant 0.000000e+00 : f32
      %139 = vector.broadcast %cst_37 : f32 to vector<2x32xf32>
      %140 = arith.maximumf %138, %139 : vector<2x32xf32>
      %c0_38 = arith.constant 0 : index
      %c0_39 = arith.constant 0 : index
      %141 = vector.load %arg7[%c0_38, %c0_39] : memref<32x10xf32, #tpu.memory_space<vmem>>, vector<32x10xf32>
      %cst_40 = arith.constant dense<0.000000e+00> : vector<2x10xf32>
      %142 = tpu.matmul %140, %141, %cst_40 {dimension_numbers = #tpu.dot_dimension_numbers<[1], [0], [0], [1], [0, 0, 1, 1], [], []>} : vector<2x32xf32>, vector<32x10xf32>, vector<2x10xf32> -> vector<2x10xf32>
      %c0_41 = arith.constant 0 : index
      %c0_42 = arith.constant 0 : index
      %143 = vector.load %arg8[%c0_41, %c0_42] : memref<1x10xf32, #tpu.memory_space<vmem>>, vector<1x10xf32>
      %144 = vector.broadcast %143 : vector<1x10xf32> to vector<2x10xf32>
      %145 = arith.addf %142, %144 : vector<2x10xf32>
      %cst_43 = arith.constant 0.000000e+00 : f32
      %146 = vector.broadcast %cst_43 : f32 to vector<2x10xf32>
      %147 = arith.maximumf %145, %146 : vector<2x10xf32>
      %c0_44 = arith.constant 0 : index
      %c0_45 = arith.constant 0 : index
      %148 = vector.load %arg9[%c0_44, %c0_45] : memref<2x10xf32, #tpu.memory_space<vmem>>, vector<2x10xf32>
      tpu.vector_store %arg9[%c0_44, %c0_45], %147 {strides = array<i32>} : memref<2x10xf32, #tpu.memory_space<vmem>>, vector<2x10xf32>,
    } else {
    }
    return
  }
  func.func @transform_0(%arg0: i32) -> (i32, i32) {
    %c0_i32 = arith.constant 0 : i32
    %c0_i32_0 = arith.constant 0 : i32
    %c0_i32_1 = arith.constant 0 : i32
    return %c0_i32, %c0_i32_0 : i32, i32
  }
  func.func @transform_1(%arg0: i32) -> (i32, i32, i32) {
    %c0_i32 = arith.constant 0 : i32
    %c0_i32_0 = arith.constant 0 : i32
    %c0_i32_1 = arith.constant 0 : i32
    return %arg0, %c0_i32, %c0_i32_0 : i32, i32, i32
  }
  func.func @transform_2(%arg0: i32) -> (i32, i32, i32) {
    %c0_i32 = arith.constant 0 : i32
    %c0_i32_0 = arith.constant 0 : i32
    %c0_i32_1 = arith.constant 0 : i32
    return %arg0, %c0_i32, %c0_i32_0 : i32, i32, i32
  }
  func.func @transform_3(%arg0: i32) -> (i32, i32, i32) {
    %c0_i32 = arith.constant 0 : i32
    %c0_i32_0 = arith.constant 0 : i32
    %c0_i32_1 = arith.constant 0 : i32
    return %arg0, %c0_i32, %c0_i32_0 : i32, i32, i32
  }
  func.func @transform_4(%arg0: i32) -> (i32, i32) {
    %c0_i32 = arith.constant 0 : i32
    %c0_i32_0 = arith.constant 0 : i32
    %c0_i32_1 = arith.constant 0 : i32
    return %c0_i32, %c0_i32_0 : i32, i32
  }
  func.func @transform_5(%arg0: i32) -> (i32, i32) {
    %c0_i32 = arith.constant 0 : i32
    %c0_i32_0 = arith.constant 0 : i32
    %c0_i32_1 = arith.constant 0 : i32
    return %c0_i32, %c0_i32_0 : i32, i32
  }
  func.func @transform_6(%arg0: i32) -> (i32, i32) {
    %c0_i32 = arith.constant 0 : i32
    %c0_i32_0 = arith.constant 0 : i32
    %c0_i32_1 = arith.constant 0 : i32
    return %c0_i32, %c0_i32_0 : i32, i32
  }
  func.func @transform_7(%arg0: i32) -> (i32, i32) {
    %c0_i32 = arith.constant 0 : i32
    %c0_i32_0 = arith.constant 0 : i32
    %c0_i32_1 = arith.constant 0 : i32
    return %c0_i32, %c0_i32_0 : i32, i32
  }
  func.func @transform_8(%arg0: i32) -> (i32, i32) {
    %c0_i32 = arith.constant 0 : i32
    %c0_i32_0 = arith.constant 0 : i32
    %c0_i32_1 = arith.constant 0 : i32
    return %c0_i32, %c0_i32_0 : i32, i32
  }
}

</mosaic_0001>

<bundles_post_ra>
// kernel: _lambda_.1
= control target key start
LH: loop header
LB: loop body
LE: loop exit
PB: predicated region body
PF: predicated region fallthrough
CT: control target
= control target key end

     0   :  { %13 = vsyncpa [#allocation4], 0  ;;  %s1513_s27 = smov 0   ;;  %s1712_s0 = inlined_call_operand.vmem [shape: f32[8,32], index: 0, kind: input, shape index: {}]   ;;  %s1713_s1 = inlined_call_operand.vmem [shape: f32[3,32,128], index: 1, kind: input, shape index: {}]   ;;  %s1714_s2 = inlined_call_operand.vmem [shape: f32[3,32,128], index: 2, kind: input, shape index: {}]   ;;  %s1715_s3 = inlined_call_operand.vmem [shape: f32[3,1,128], index: 3, kind: input, shape index: {}]   ;;  %s1716_s4 = inlined_call_operand.vmem [shape: f32[128,32], index: 4, kind: input, shape index: {}]   ;;  %s1717_s5 = inlined_call_operand.vmem [shape: f32[1,32], index: 5, kind: input, shape index: {}]   ;;  %s1718_s6 = inlined_call_operand.vmem [shape: f32[32,10], index: 6, kind: input, shape index: {}]   ;;  %s1719_s7 = inlined_call_operand.vmem [shape: f32[1,10], index: 7, kind: input, shape index: {}]   ;;  %s1720_s8 = inlined_call_operand.hbm [shape: f32[2,10], index: 8, kind: output, shape index: {}]  }
   0x1 LB: > { %s1519_s28 = sadd.s32 4294967295, %s1454_s27   ;;  %p1126_p0 = scmp.ge.s32.totalorder %s1454_s27, 1  ;;  %s1454_s27 = sphi %s1513_s27, %s19_s27  }
   0x2   : > { %p276_p1 = scmp.lt.s32.totalorder %s1454_s27, 4 }
   0x4   : > { %p277_p2 = pnand %p1126_p0, %p276_p1 }
   0x5   : > { %p313_p3 = scmp.lt.s32.totalorder (!%p277_p2), %s1519_s28, 2  ;;  %p1131_p4 = scmp.ne.s32.totalorder (!%p277_p2), %s1519_s28, 0 }
   0x6   : > { %280 = sbr.rel (%p277_p2) target bundleno = 3434 (0xd6a), region = 52 }
   0xd   : > { %s1525_s29 = scalar_select %p313_p3, %s1519_s28, 2 }
   0xe   : > { %329 = sbr.rel (%p1131_p4) target bundleno = 21 (0x15), region = 56  ;;  %v330_v0 = vld [vmem:[%s1712_s0] sm:$0xff] (!%p1131_p4)  ;;  %vm331_vm0 = vcmask (!%p1131_p4), 261120  }
   0xf   : > { %s1150_s30 = sshll.u32 %s1525_s29, 5  ;;  %s325_s11 = scalar_lea.vmem %s1715_s3, %s1525_s29  ;;  %332 = vst.msk [vmem:[#allocation2] sm:$0xff] (!%p1131_p4), %vm331_vm0, %v330_v0 }
  0x10   : > { %s317_s14 = scalar_lea.vmem %s1713_s1, %s1150_s30  ;;  %s322_s17 = scalar_lea.vmem %s1714_s2, %s1150_s30 }
  0x15 PF: > { %v334_v1 = vld [vmem:[%s317_s14] sm:$0xff]  ;;  %v335_v2 = vld [vmem:[%s317_s14 + $0x8] sm:$0xff]  ;;  %v1456_v4 = vmov 0.0|0.0   ;;  %v336_v7 = vld [vmem:[%s317_s14 + $0x10] sm:$0xff]  ;;  %vm1457_vm1 = vmmov 0   ;;  %v1458_v12 = vmov 0.0  }
  0x16   : > { %v338_v3 = vld [vmem:[%s322_s17] sm:$0xff]  ;;  %1300 = vmatprep.subr.bf16.mxu0 %v1456_v4  ;;  %v1301_v5 = vpack.c.bf16 %v335_v2, %v334_v1  ;;  %1306 = vmatprep.subr.bf16.mxu1 %v1456_v4  ;;  %v339_v6 = vld [vmem:[%s322_s17 + $0x8] sm:$0xff]  ;;  %v337_v8 = vld [vmem:[%s317_s14 + $0x18] sm:$0xff]  ;;  %vm349_vm2 = vcmask 261120   ;;  %s1459_s22 = smov 64   ;;  %s1460_s23 = smov 32  }
  0x17   : > { %v1307_v9 = vpack.c.bf16 %v339_v6, %v338_v3  ;;  %v340_v10 = vld [vmem:[%s322_s17 + $0x10] sm:$0xff]  ;;  %v341_v11 = vld [vmem:[%s322_s17 + $0x18] sm:$0xff]  ;;  %1207 = vmatprep.mubr.msk.f32.mxu0 %vm1457_vm1, %v1458_v12  ;;  %1218 = vmatprep.mubr.msk.f32.mxu1 %vm1457_vm1, %v1458_v12  ;;  %v1304_v13 = vpack.c.bf16 %v337_v8, %v336_v7  ;;  %v333_v15 = vld [vmem:[#allocation2] sm:$0xff]  ;;  %p1141_p5 = scmp.ge.s32.totalorder %s1519_s28, 2 }
  0x18   : > { %1302 = vmatpush3.bf16.msra.mxu0 %v1301_v5  ;;  %v1310_v14 = vpack.c.bf16 %v341_v11, %v340_v10  ;;  %v1132_v16 = vld [vmem:[%s325_s11] ss:$0 sm:$0xff]  ;;  %vm845_vm3 = vcmask (!%p1141_p5), 1041408   ;;  %vm847_vm4 = vcmask (!%p1141_p5), 1043456   ;;  %vm849_vm5 = vcmask (!%p1141_p5), 1045504   ;;  %s1461_s24 = smov (!%p1141_p5), 32  }
  0x19   : > { %1308 = vmatpush3.bf16.msra.mxu1 %v1307_v9  ;;  %1303 = vmatprep.subr.bf16.mxu0 %v1456_v4 }
  0x1a   : > { %1309 = vmatprep.subr.bf16.mxu1 %v1456_v4 }
  0x1c   : > { %1305 = vmatpush3.bf16.msra.mxu0 %v1304_v13 }
  0x1d   : > { %1311 = vmatpush3.bf16.msra.mxu1 %v1310_v14  ;;  %1312 = vmatprep.subr.bf16.mxu0 %v1456_v4 }
  0x1e   : > { %1318 = vmatprep.subr.bf16.mxu1 %v1456_v4 }
  0x1f   : > { %1208 = vmatmul.mubr.msk.f32.vlgmr.msra.gmra.mrb[0].mxu0 %vm349_vm2, %v333_v15 }
  0x20   : > { %1219 = vmatmul.mubr.f32.vlgmr.msra.gmra.mrb[0].mxu1 %v1458_v12  ;;  %1314 = vmatpush3.bf16.msra.mxu0 %v1307_v9 }
  0x21   : > { %1315 = vmatprep.subr.bf16.mxu0 %v1456_v4  ;;  %1229 = vmatprep.mubr.msk.f32.mxu0 %vm1457_vm1, %v1458_v12 }
  0x22   : > { %1320 = vmatpush3.bf16.msra.mxu1 %v1307_v9  ;;  %1240 = vmatprep.mubr.msk.f32.mxu1 %vm1457_vm1, %v1458_v12 }
  0x23   : > { %1321 = vmatprep.subr.bf16.mxu1 %v1456_v4 }
  0x24   : > { %1317 = vmatpush3.bf16.msra.mxu0 %v1310_v14 }
  0x25   : > { %1324 = vmatprep.subr.bf16.mxu0 %v1456_v4 }
  0x26   : > { %1323 = vmatpush3.bf16.msra.mxu1 %v1310_v14 }
  0xf2   : > { %v419_v17 = vpop.f32.mrb[0].mxu0 }
  0xf3   : > { %v1561_v18 = vadd.f32 %v1132_v16, %v419_v17  ;;  %v1209_v19 = vpop.f32.mrb[1].mxu0  ;;  %v492_v20 = vpop.f32.mrb[0].mxu1 }
  0xf4   : > { %v1220_v21 = vpop.f32.mrb[1].mxu1 }
  0xf5   : > { %v496_v22 = vadd.f32 %v492_v20, %v1561_v18 }
  0xf7   : > { %1386 = vtanh.f32 %v496_v22  ;;  %v1134_v24 = vmul.f32 -1.442695, %v496_v22 }
  0xf9   : > { %1388 = vpow2.f32 %v1134_v24 }
 0x101   : > { %v1387_v23 = vpop.eup %1386 }
 0x102   : > { %506 = vrot.lane.b32.xlu0 %v1387_v23, %s1459_s22 }
 0x103   : > { %v1389_v25 = vpop.eup %1388 }
 0x104   : > { %v500_v26 = vadd.f32 1.0, %v1389_v25 }
 0x106   : > { %1390 = vrcp.f32 %v500_v26 }
 0x110   : > { %v1391_v27 = vpop.eup %1390 }
 0x111   : > { %v504_v30 = vmul.f32 0.0, %v1391_v27 }
 0x174   : > { %v507_v28 = vpop.permute.xlu0 %506 }
 0x175   : > { %v509_v29 = vmul.f32 %v1391_v27, %v507_v28 }
 0x177   : > { %511 = vrot.lane.b32.xlu0 %v509_v29, %s1460_s23 }
 0x1e9   : > { %v512_v31 = vpop.permute.xlu0 %511 }
 0x1ea   : > { %v514_v32 = vadd.f32 %v512_v31, %v504_v30 }
 0x1ec   : > { %1392 = vtanh.f32 %v514_v32  ;;  %v608_v48 = vrot.slane %v514_v32, 6 }
 0x1f6   : > { %v1393_v33 = vpop.eup %1392 }
 0x1f7   : > { %517 = vrot.lane.b32.xlu1 %v1393_v33, %s1459_s22 }
 0x269   : > { %v518_v34 = vpop.permute.xlu1 %517 }
 0x26a   : > { %v1567_v35 = vmul.f32 %v1391_v27, %v518_v34 }
 0x26c   : > { %522 = vrot.lane.b32.xlu1 %v1567_v35, %s1460_s23 }
 0x2de   : > { %v1571_v36 = vpop.permute.xlu1 %522 }
 0x2df   : > { %1230 = vmatmul.mubr.msk.f32.vlgmr.msra.gmra.mrb[2].mxu0 %vm349_vm2, %v1571_v36 }
 0x2e0   : > { %1326 = vmatpush3.bf16.msra.mxu0 %v1307_v9  ;;  %1251 = vmatprep.mubr.msk.f32.mxu0 %vm1457_vm1, %v1458_v12 }
 0x2e1   : > { %1327 = vmatprep.subr.bf16.mxu0 %v1456_v4 }
 0x2e4   : > { %1329 = vmatpush3.bf16.msra.mxu0 %v1310_v14 }
 0x3b2   : > { %v592_v37 = vpop.f32.mrb[2].mxu0 }
 0x3b3   : > { %v597_v38 = vrot.slane %v592_v37, 6  ;;  %v1231_v39 = vpop.f32.mrb[3].mxu0 }
 0x3b5   : > { %v599_v40 = vadd.f32 %v597_v38, %v1561_v18 }
 0x3b7   : > { %1394 = vtanh.f32 %v599_v40  ;;  %v1136_v42 = vmul.f32 -1.442695, %v599_v40 }
 0x3b9   : > { %1396 = vpow2.f32 %v1136_v42 }
 0x3c1   : > { %v1395_v41 = vpop.eup %1394 }
 0x3c2   : > { %612 = vrot.lane.b32.xlu0 %v1395_v41, %s1459_s22 }
 0x3c3   : > { %v1397_v43 = vpop.eup %1396 }
 0x3c4   : > { %v603_v44 = vadd.f32 1.0, %v1397_v43 }
 0x3c6   : > { %1398 = vrcp.f32 %v603_v44 }
 0x3d0   : > { %v1399_v45 = vpop.eup %1398 }
 0x3d1   : > { %v610_v49 = vmul.f32 %v1399_v45, %v608_v48 }
 0x434   : > { %v613_v46 = vpop.permute.xlu0 %612 }
 0x435   : > { %v615_v47 = vmul.f32 %v1399_v45, %v613_v46 }
 0x437   : > { %617 = vrot.lane.b32.xlu1 %v615_v47, %s1460_s23 }
 0x4a9   : > { %v618_v50 = vpop.permute.xlu1 %617 }
 0x4aa   : > { %v620_v51 = vadd.f32 %v618_v50, %v610_v49 }
 0x4ac   : > { %1400 = vtanh.f32 %v620_v51  ;;  %v715_v4 = vrot.slane %v620_v51, 6 }
 0x4b6   : > { %v1401_v52 = vpop.eup %1400 }
 0x4b7   : > { %623 = vrot.lane.b32.xlu0 %v1401_v52, %s1459_s22 }
 0x529   : > { %v624_v53 = vpop.permute.xlu0 %623 }
 0x52a   : > { %v1581_v54 = vmul.f32 %v1399_v45, %v624_v53 }
 0x52c   : > { %v628_v55 = vrot.slane %v1581_v54, 2  ;;  %v846_v31 = vsel (!%p1141_p5), %vm845_vm3, %v1567_v35, %v1581_v54 }
 0x52e   : > { %629 = vrot.lane.b32.xlu1 %v628_v55, %s1460_s23 }
 0x5a0   : > { %v630_v56 = vpop.permute.xlu1 %629 }
 0x5a1   : > { %1241 = vmatmul.mubr.msk.f32.vlgmr.msra.gmra.mrb[2].mxu1 %vm349_vm2, %v630_v56 }
 0x674   : > { %v699_v57 = vpop.f32.mrb[2].mxu1 }
 0x675   : > { %v704_v58 = vrot.slane %v699_v57, 4  ;;  %v1242_v59 = vpop.f32.mrb[3].mxu1 }
 0x677   : > { %v706_v60 = vadd.f32 %v704_v58, %v1561_v18 }
 0x679   : > { %1402 = vtanh.f32 %v706_v60  ;;  %v1138_v62 = vmul.f32 -1.442695, %v706_v60 }
 0x67b   : > { %1404 = vpow2.f32 %v1138_v62 }
 0x683   : > { %v1403_v61 = vpop.eup %1402 }
 0x684   : > { %719 = vrot.lane.b32.xlu0 %v1403_v61, %s1459_s22 }
 0x685   : > { %v1405_v63 = vpop.eup %1404 }
 0x686   : > { %v710_v0 = vadd.f32 1.0, %v1405_v63 }
 0x688   : > { %1406 = vrcp.f32 %v710_v0 }
 0x692   : > { %v1407_v1 = vpop.eup %1406 }
 0x693   : > { %v717_v5 = vmul.f32 %v1407_v1, %v715_v4 }
 0x6f6   : > { %v720_v2 = vpop.permute.xlu0 %719 }
 0x6f7   : > { %v722_v3 = vmul.f32 %v1407_v1, %v720_v2 }
 0x6f9   : > { %724 = vrot.lane.b32.xlu1 %v722_v3, %s1460_s23 }
 0x76b   : > { %v725_v6 = vpop.permute.xlu1 %724 }
 0x76c   : > { %v727_v7 = vadd.f32 %v725_v6, %v717_v5 }
 0x76e   : > { %1408 = vtanh.f32 %v727_v7  ;;  %v822_v25 = vrot.slane %v727_v7, 6 }
 0x778   : > { %v1409_v8 = vpop.eup %1408 }
 0x779   : > { %730 = vrot.lane.b32.xlu0 %v1409_v8, %s1459_s22 }
 0x7eb   : > { %v731_v9 = vpop.permute.xlu0 %730 }
 0x7ec   : > { %v1592_v10 = vmul.f32 %v1407_v1, %v731_v9 }
 0x7ee   : > { %v735_v11 = vrot.slane %v1592_v10, 4  ;;  %v848_v32 = vsel (!%p1141_p5), %vm847_vm4, %v846_v31, %v1592_v10 }
 0x7f0   : > { %736 = vrot.lane.b32.xlu1 %v735_v11, %s1460_s23 }
 0x862   : > { %v737_v12 = vpop.permute.xlu1 %736 }
 0x863   : > { %1252 = vmatmul.mubr.msk.f32.vlgmr.msra.gmra.mrb[4].mxu0 %vm349_vm2, %v737_v12 }
 0x936   : > { %v806_v13 = vpop.f32.mrb[4].mxu0 }
 0x937   : > { %v811_v14 = vrot.slane %v806_v13, 2  ;;  %v1253_v15 = vpop.f32.mrb[5].mxu0 }
 0x939   : > { %v813_v16 = vadd.f32 %v811_v14, %v1561_v18 }
 0x93b   : > { %1410 = vtanh.f32 %v813_v16  ;;  %v1140_v19 = vmul.f32 -1.442695, %v813_v16 }
 0x93d   : > { %1412 = vpow2.f32 %v1140_v19 }
 0x945   : > { %v1411_v17 = vpop.eup %1410 }
 0x946   : > { %826 = vrot.lane.b32.xlu0 %v1411_v17, %s1459_s22 }
 0x947   : > { %v1413_v20 = vpop.eup %1412 }
 0x948   : > { %v817_v21 = vadd.f32 1.0, %v1413_v20 }
 0x94a   : > { %1414 = vrcp.f32 %v817_v21 }
 0x954   : > { %v1415_v22 = vpop.eup %1414 }
 0x955   : > { %v824_v26 = vmul.f32 %v1415_v22, %v822_v25 }
 0x9b8   : > { %v827_v23 = vpop.permute.xlu0 %826 }
 0x9b9   : > { %v829_v24 = vmul.f32 %v1415_v22, %v827_v23 }
 0x9bb   : > { %831 = vrot.lane.b32.xlu1 %v829_v24, %s1460_s23 }
 0xa2d   : > { %v832_v27 = vpop.permute.xlu1 %831 }
 0xa2e   : > { %v834_v28 = vadd.f32 %v832_v27, %v824_v26 }
 0xa30   : > { %1416 = vtanh.f32 %v834_v28 }
 0xa3a   : > { %v1417_v18 = vpop.eup %1416 }
 0xa3b   : > { %837 = vrot.lane.b32.xlu0 %v1417_v18, %s1459_s22 }
 0xaa8   : > { %844 = sbr.rel (%p1141_p5) target bundleno = 2853 (0xb25), region = 60 }
 0xaad   : > { %v838_v29 = vpop.permute.xlu0 %837 }
 0xaae   : > { %v1603_v30 = vmul.f32 %v1415_v22, %v838_v29 }
 0xab0   : > { %v850_v33 = vsel %vm849_vm5, %v848_v32, %v1603_v30 }
 0xab1   : > { %852 = vrot.lane.b32.xlu0 %v850_v33, %s1461_s24 }
 0xb23   : > { %v853_v34 = vpop.permute.xlu0 %852 }
 0xb24   : > { %855 = vst.msk [vmem:[#allocation2] sm:$0xff] %vm349_vm2, %v853_v34 }
 0xb25 PF: > { %p1142_p6 = scmp.ne.s32.totalorder %s1519_s28, 2 }
 0xb26   : > { %v875_v37 = vld [vmem:[%s1716_s4] sm:$0xff] (!%p1142_p6)  ;;  %v876_v35 = vld [vmem:[%s1716_s4 + $0x8] sm:$0xff] (!%p1142_p6)  ;;  %v877_v38 = vld [vmem:[%s1716_s4 + $0x10] sm:$0xff] (!%p1142_p6)  ;;  %s1462_s11 = smov (!%p1142_p6), 64   ;;  %v1463_v39 = vmov (!%p1142_p6), 0.0|0.0   ;;  %vm1464_vm6 = vmmov (!%p1142_p6), 0  }
 0xb27   : > { %859 = sbr.rel (%p1142_p6) target bundleno = 3409 (0xd51), region = 64  ;;  %861 = vrot.lane.b32.xlu0 (!%p1142_p6), %v628_v55, %s1462_s11  ;;  %1330 = vmatprep.subr.bf16.mxu0 (!%p1142_p6), %v1463_v39  ;;  %v1331_v40 = vpack.c.bf16 (!%p1142_p6), %v876_v35, %v875_v37  ;;  %v878_v41 = vld [vmem:[%s1716_s4 + $0x18] sm:$0xff] (!%p1142_p6)  ;;  %v1465_v42 = vmov (!%p1142_p6), 0.0   ;;  %v879_v44 = vld [vmem:[%s1716_s4 + $0x20] sm:$0xff] (!%p1142_p6)  ;;  %v880_v45 = vld [vmem:[%s1716_s4 + $0x28] sm:$0xff] (!%p1142_p6)  ;;  %s1466_s18 = smov (!%p1142_p6), 96  }
 0xb28   : > { %1286 = vmatprep.mubr.msk.f32.mxu0 (!%p1142_p6), %vm1464_vm6, %v1465_v42  ;;  %1354 = vmatprep.subr.bf16.mxu1 (!%p1142_p6), %v1463_v39  ;;  %v1334_v43 = vpack.c.bf16 (!%p1142_p6), %v878_v41, %v877_v38  ;;  %v969_v46 = vld [vmem:[%s1718_s6] sm:$0xff] (!%p1142_p6)  ;;  %v970_v47 = vld [vmem:[%s1718_s6 + $0x8] sm:$0xff] (!%p1142_p6)  ;;  %v1337_v49 = vpack.c.bf16 (!%p1142_p6), %v880_v45, %v879_v44  ;;  %v881_v50 = vld [vmem:[%s1716_s4 + $0x30] sm:$0xff] (!%p1142_p6)  ;;  %vm871_vm7 = vcmask (!%p1142_p6), 523264   ;;  %v868_v2 = vrot.slane (!%p1142_p6), %v1603_v30, 6 }
 0xb29   : > { %1332 = vmatpush3.bf16.msra.mxu0 (!%p1142_p6), %v1331_v40  ;;  %1297 = vmatprep.mubr.msk.f32.mxu1 (!%p1142_p6), %vm1464_vm6, %v1465_v42  ;;  %v1355_v48 = vpack.c.bf16 (!%p1142_p6), %v970_v47, %v969_v46  ;;  %v882_v51 = vld [vmem:[%s1716_s4 + $0x38] sm:$0xff] (!%p1142_p6)  ;;  %v883_v53 = vld [vmem:[%s1716_s4 + $0x40] sm:$0xff] (!%p1142_p6)  ;;  %v884_v54 = vld [vmem:[%s1716_s4 + $0x48] sm:$0xff] (!%p1142_p6)  ;;  %vm873_vm8 = vcmask (!%p1142_p6), 785408   ;;  %vm1054_vm9 = vcmask (!%p1142_p6), 74752  }
 0xb2a   : > { %1333 = vmatprep.subr.bf16.mxu0 (!%p1142_p6), %v1463_v39  ;;  %v1340_v52 = vpack.c.bf16 (!%p1142_p6), %v882_v51, %v881_v50  ;;  %v1343_v55 = vpack.c.bf16 (!%p1142_p6), %v884_v54, %v883_v53  ;;  %v885_v56 = vld [vmem:[%s1716_s4 + $0x50] sm:$0xff] (!%p1142_p6)  ;;  %v886_v57 = vld [vmem:[%s1716_s4 + $0x58] sm:$0xff] (!%p1142_p6)  ;;  %v887_v59 = vld [vmem:[%s1716_s4 + $0x60] sm:$0xff] (!%p1142_p6) }
 0xb2b   : > { %864 = vrot.lane.b32.xlu0 (!%p1142_p6), %v735_v11, %s1466_s18  ;;  %1356 = vmatpush3.bf16.msra.mxu1 (!%p1142_p6), %v1355_v48  ;;  %v1346_v58 = vpack.c.bf16 (!%p1142_p6), %v886_v57, %v885_v56  ;;  %v888_v60 = vld [vmem:[%s1716_s4 + $0x68] sm:$0xff] (!%p1142_p6)  ;;  %v889_v62 = vld [vmem:[%s1716_s4 + $0x70] sm:$0xff] (!%p1142_p6)  ;;  %v890_v63 = vld [vmem:[%s1716_s4 + $0x78] sm:$0xff] (!%p1142_p6) }
 0xb2c   : > { %1357 = vmatprep.subr.bf16.mxu1 (!%p1142_p6), %v1463_v39  ;;  %v1349_v61 = vpack.c.bf16 (!%p1142_p6), %v888_v60, %v887_v59  ;;  %v1352_v0 = vpack.c.bf16 (!%p1142_p6), %v890_v63, %v889_v62  ;;  %v971_v7 = vld [vmem:[%s1718_s6 + $0x10] sm:$0xff] (!%p1142_p6)  ;;  %v972_v8 = vld [vmem:[%s1718_s6 + $0x18] sm:$0xff] (!%p1142_p6)  ;;  %v1143_v10 = vld [vmem:[%s1717_s5] ss:$0 sm:$0xff] (!%p1142_p6) }
 0xb2d   : > { %1335 = vmatpush3.bf16.msra.mxu0 (!%p1142_p6), %v1334_v43  ;;  %v1358_v9 = vpack.c.bf16 (!%p1142_p6), %v972_v8, %v971_v7  ;;  %v1144_v14 = vld [vmem:[%s1719_s7] ss:$0 sm:$0xff] (!%p1142_p6) }
 0xb2e   : > { %1336 = vmatprep.subr.bf16.mxu0 %v1463_v39 }
 0xb2f   : > { %1359 = vmatpush3.bf16.msra.mxu1 %v1358_v9 }
 0xb31   : > { %1338 = vmatpush3.bf16.msra.mxu0 %v1337_v49 }
 0xb32   : > { %1339 = vmatprep.subr.bf16.mxu0 %v1463_v39 }
 0xb35   : > { %1341 = vmatpush3.bf16.msra.mxu0 %v1340_v52 }
 0xb36   : > { %1342 = vmatprep.subr.bf16.mxu0 %v1463_v39 }
 0xb39   : > { %1344 = vmatpush3.bf16.msra.mxu0 %v1343_v55 }
 0xb3a   : > { %1345 = vmatprep.subr.bf16.mxu0 %v1463_v39 }
 0xb3d   : > { %1347 = vmatpush3.bf16.msra.mxu0 %v1346_v58 }
 0xb3e   : > { %1348 = vmatprep.subr.bf16.mxu0 %v1463_v39 }
 0xb41   : > { %1350 = vmatpush3.bf16.msra.mxu0 %v1349_v61 }
 0xb42   : > { %1351 = vmatprep.subr.bf16.mxu0 %v1463_v39 }
 0xb45   : > { %1353 = vmatpush3.bf16.msra.mxu0 %v1352_v0 }
 0xb99   : > { %v862_v1 = vpop.permute.xlu0 %861 }
 0xb9a   : > { %v870_v3 = vsel %vm349_vm2, %v1571_v36, %v862_v1 }
 0xb9d   : > { %v865_v4 = vpop.permute.xlu0 %864 }
 0xb9e   : > { %v872_v5 = vsel %vm871_vm7, %v870_v3, %v865_v4 }
 0xb9f   : > { %v874_v6 = vsel %vm873_vm8, %v872_v5, %v868_v2 }
 0xba0   : > { %1287 = vmatmul.mubr.f32.vlgmr.msra.gmra.mrb[0].mxu0 %v874_v6 }
 0xc73   : > { %v964_v11 = vpop.f32.mrb[0].mxu0 }
 0xc74   : > { %v965_v36 = vadd.f32 %v1143_v10, %v964_v11  ;;  %v1288_v12 = vpop.f32.mrb[1].mxu0 }
 0xc76   : > { %v968_v13 = vmax.f32 %v965_v36, 0.0 }
 0xc78   : > { %1298 = vmatmul.mubr.msk.f32.vlgmr.msra.gmra.mrb[0].mxu1 %vm349_vm2, %v968_v13 }
 0xd4b   : > { %v1049_v15 = vpop.f32.mrb[0].mxu1 }
 0xd4c   : > { %v1050_v16 = vadd.f32 %v1144_v14, %v1049_v15  ;;  %v1299_v17 = vpop.f32.mrb[1].mxu1 }
 0xd4e   : > { %v1053_v19 = vmax.f32 %v1050_v16, 0.0 }
 0xd50   : > { %1055 = vst.msk [vmem:[#allocation3] sm:$0x3] %vm1054_vm9, %v1053_v19 }
 0xd51 PF: > { %p1364_p7 = scmp.eq.s32.totalorder %s1519_s28, 2  ;;  %s1467_s11 = smov [#allocation3]  }
 0xd52   : > { %s1063_s12 = sshll.u32 %s1467_s11, 4  ;;  %s1064_s12 = int_to_ptr.vmem [resolvable:$true] %s1063_s12 }
 0xd53   : > { %s1418_s13 = scalar_lea.vmem %s1064_s12, 32  ;;  %p1425_p11 = scmp.lt.s32.totalorder %s1064_s12, %s1064_s12 }
 0xd54   : > { %p1419_p8 = scmp.ne.s32.totalorder %s1064_s12, %s1418_s13  ;;  %p1426_p12 = scmp.lt.s32.totalorder %s1418_s13, %s1418_s13 }
 0xd56   : > { %p1420_p9 = pnand %p1419_p8, %p1364_p7  ;;  %p1427_p13 = por %p1426_p12, %p1425_p11 }
 0xd58   : > { %p1421_p10 = pneg %p1420_p9 }
 0xd5a   : > { %p1428_p0 = pnand %p1427_p13, %p1421_p10 }
 0xd5c   : > { %1431 = shalt.err (!%p1428_p0)
}
 0xd5d   : > { %s1432_s16 = scalar_lea.hbm %s1720_s8, 32 }
 0xd5e   : > { %p1433_p1 = scmp.ne.s32.totalorder %s1720_s8, %s1432_s16  ;;  %p1438_p4 = scmp.lt.u32.totalorder %s1432_s16, %s1720_s8 }
 0xd60   : > { %p1434_p2 = pnand %p1433_p1, %p1364_p7 }
 0xd62   : > { %p1435_p3 = pneg %p1434_p2 }
 0xd64   : > { %p1440_p5 = pnand %p1438_p4, %p1435_p3 }
 0xd66   : > { %1443 = shalt.err (!%p1440_p5)
}
 0xd67   : > { %1361 = dma.vmem_to_hbm [thread:$0]  (%p1364_p7), %s1064_s12, 32, %s1720_s8, [#allocation4]  }
 0xd68   : > { %1449 = dma.done.wait (%p1364_p7), [#allocation4], 32  }
 0xd69   : > { %1451 = vsyncadd (%p1364_p7), [#allocation4], 4294967264 }
 0xd6a PF: > { %s19_s27 = sadd.s32 1, %s1454_s27  }
 0xd6b   : > { %p16_p6 = scmp.ge.s32.totalorder %s19_s27, 5  }
 0xd6d   :  { %18 = sbr.rel (!%p16_p6) target bundleno = 1 (0x1), region = 97 }
 0xd74   :  { %1076 = vsyncpa [#allocation4], 1 }
 0xd75   :  { %1078 = vsyncpa [#allocation4 + $0x1], 1 }

</bundles_post_ra>
